<compile_context>
chip_gen: v7x
topology: tpu7x:2x2x1
jax: 0.10.0
libtpu: 0.0.40
codegen_flags: <defaults>
</compile_context>

<pallas_src>
import functools

import jax
import jax.numpy as jnp
import numpy as np
from jax.experimental import pallas as pl
from jax.experimental.pallas import tpu as pltpu

LANE = 128
SUBLANE = 8


def _round_up(x, m):
    return ((x + m - 1) // m) * m


# --------------------------------------------------------------------------
# Offline constant preparation (runs ONCE, outside the forward hot path).
# --------------------------------------------------------------------------
def prepare_decoder_constants(params, batch, unflat_shape, pose_dims):
    C0, H0, W0 = unflat_shape
    lin_w = np.asarray(params["lin_w"], np.float32)   # (pose+latent, C0*H0*W0)
    lin_b = np.asarray(params["lin_b"], np.float32)

    # ---- Linear: permute output columns CHW -> (ih, iw, c) and pad each
    #      ih-block to LANE lanes so the in-kernel Unflatten is one aligned
    #      reshape (B, H0*blk) -> (B*H0, blk).
    blk = _round_up(W0 * C0, LANE)
    wlin = np.zeros((lin_w.shape[0], H0 * blk), np.float32)
    blin = np.zeros((1, H0 * blk), np.float32)
    for ih in range(H0):
        for iw in range(W0):
            for c in range(C0):
                src = c * H0 * W0 + ih * W0 + iw
                dst = ih * blk + iw * C0 + c
                wlin[:, dst] = lin_w[:, src]
                blin[0, dst] = lin_b[src]

    # ConvTranspose2d layers as constructed by the module (filters=[8,16,32]):
    #   ConvT(32->16, k3, s2, p0) + ReLU
    #   ConvT(16-> 8, k3, s2, p1) + ReLU
    #   ConvT( 8-> 1, k2, s2, p1)
    layer_params = [
        (np.asarray(params["ct0_w"], np.float32), np.asarray(params["ct0_b"], np.float32), 2, 0, True),
        (np.asarray(params["ct1_w"], np.float32), np.asarray(params["ct1_b"], np.float32), 2, 1, True),
        (np.asarray(params["ct2_w"], np.float32), np.asarray(params["ct2_b"], np.float32), 2, 1, False),
    ]

    consts = [jnp.asarray(wlin), jnp.asarray(blin)]
    layer_cfg = []
    H, W = H0, W0
    lane_in = blk
    rows_in_pad = _round_up(batch * H0, SUBLANE)
    rows0_pad = rows_in_pad
    Cout = None

    for w_pt, bias, stride, padding, relu in layer_params:
        Cin, Cout, K, _ = w_pt.shape
        assert lane_in == _round_up(W * Cin, LANE)
        Ho = (H - 1) * stride + K - 2 * padding
        Wo = (W - 1) * stride + K - 2 * padding
        lane_out = _round_up(Wo * Cout, LANE)
        rows_out_pad = _round_up(batch * Ho, SUBLANE)

        # Wcat: lane block kp holds the width-banded weights for height tap
        # kh = K-1-kp.   rows: iw*Cin + ci    cols: kp*lane_out + ow*Cout + co
        wcat = np.zeros((lane_in, K * lane_out), np.float32)
        for kp in range(K):
            kh = K - 1 - kp
            for iw in range(W):
                for ow in range(Wo):
                    kw = ow - stride * iw + padding
                    if 0 <= kw < K:
                        wcat[iw * Cin:(iw + 1) * Cin,
                             kp * lane_out + ow * Cout: kp * lane_out + (ow + 1) * Cout] = \
                            w_pt[:, :, kh, kw]

        # Ecat: K separate 0/1 gather blocks (stacked on a leading axis);
        # block kp picks the input row contributing to each output row through
        # height tap kh = K-1-kp.  Columns addressing padded input rows stay
        # zero, so bias/ReLU garbage in pad rows never propagates.
        ecat = np.zeros((K, rows_out_pad, rows_in_pad), np.float32)
        for kp in range(K):
            for b in range(batch):
                for oh in range(Ho):
                    num = oh + kp - (K - 1 - padding)
                    if num % stride == 0:
                        ih = num // stride
                        if 0 <= ih < H:
                            ecat[kp, b * Ho + oh, b * H + ih] = 1.0

        brow = np.zeros((1, lane_out), np.float32)
        brow[0, :Wo * Cout] = np.tile(bias, Wo)

        consts += [jnp.asarray(wcat, dtype=jnp.bfloat16),   # big -> bf16 (halves DMA)
                   jnp.asarray(ecat, dtype=jnp.bfloat16),   # 0/1 -> exact in bf16
                   jnp.asarray(brow)]                        # tiny -> keep f32
        layer_cfg.append((K, lane_out, relu))
        H, W, lane_in, rows_in_pad = Ho, Wo, lane_out, rows_out_pad

    assert Cout == 1, "final ConvTranspose2d must have a single output channel"
    cfg = dict(batch=batch, H0=H0, blk=blk, rows0_pad=rows0_pad,
               layers=tuple(layer_cfg), out_hw=(H, W),
               out_slab=(rows_in_pad, lane_in))
    return consts, cfg


# --------------------------------------------------------------------------
# The single fused Pallas kernel.
# --------------------------------------------------------------------------
def _decoder_kernel(z_ref, wlin_ref, blin_ref,
                    wc0_ref, ec0_ref, b0_ref,
                    wc1_ref, ec1_ref, b1_ref,
                    wc2_ref, ec2_ref, b2_ref,
                    out_ref, *, cfg):
    B, H0, blk = cfg["batch"], cfg["H0"], cfg["blk"]

    # Linear(pose+latent -> flat) on the wrapper-concatenated z: one dot + bias.
    h = (jnp.dot(z_ref[...], wlin_ref[...], preferred_element_type=jnp.float32)
         + blin_ref[...])                                   # (B, H0*blk) f32

    # Unflatten: one aligned reshape to rows (b, ih) x lanes (iw, c), then a
    # single zero-row pad up to a sublane multiple.
    a = h.reshape(B * H0, blk)
    pad_rows = cfg["rows0_pad"] - B * H0
    if pad_rows:
        a = jnp.concatenate([a, jnp.zeros((pad_rows, blk), jnp.float32)], axis=0)

    # Three ConvTranspose2d layers: one bf16 MXU matmul (width taps, all height
    # taps banded in lanes) + K small gather matmuls accumulated in f32.
    layer_refs = ((wc0_ref, ec0_ref, b0_ref),
                  (wc1_ref, ec1_ref, b1_ref),
                  (wc2_ref, ec2_ref, b2_ref))
    for (wc_ref, ec_ref, br_ref), (K, lane_out, relu) in zip(layer_refs, cfg["layers"]):
        t = jnp.dot(a.astype(jnp.bfloat16), wc_ref[...],
                    preferred_element_type=jnp.float32)      # (rows_in, K*lane_out)
        acc = jnp.dot(ec_ref[0].astype(jnp.float32), t[:, :lane_out],
                      preferred_element_type=jnp.float32)
        for k in range(1, K):
            acc = acc + jnp.dot(ec_ref[k].astype(jnp.float32),
                                t[:, k * lane_out:(k + 1) * lane_out],
                                preferred_element_type=jnp.float32)
        a = acc + br_ref[...]
        if relu:
            a = jnp.maximum(a, 0.0)

    # Lane-dense slab store: (rows_out_pad, 128) f32, unmasked full stores.
    out_ref[...] = a


def build_decoder(params, batch, unflat_shape, pose_dims):
    consts, cfg = prepare_decoder_constants(params, batch, unflat_shape, pose_dims)
    Ho, Wo = cfg["out_hw"]
    rows_slab, lanes_slab = cfg["out_slab"]
    vmem = pl.BlockSpec(memory_space=pltpu.MemorySpace.VMEM)
    call = pl.pallas_call(
        functools.partial(_decoder_kernel, cfg=cfg),
        out_shape=jax.ShapeDtypeStruct((rows_slab, lanes_slab), jnp.float32),
        in_specs=[vmem] * (1 + len(consts)),
        out_specs=vmem,
    )

    @jax.jit
    def forward(x, x_pose):
        # z = cat([x_pose, x], dim=-1) done in the wrapper (outside the kernel).
        z = jnp.concatenate([x_pose, x], axis=-1).astype(jnp.float32)
        slab = call(z, *consts)
        # Slice / reshape of the lane-dense slab into NCHW happens in XLA.
        return slab[:batch * Ho, :Wo].reshape(batch, 1, Ho, Wo)

    return forward


# --------------------------- NumPy reference ---------------------------------
def _ref_convT(x_nchw, w, b, stride, padding):
    B, Cin, H, W = x_nchw.shape
    _, Cout, KH, KW = w.shape
    Ho = (H - 1) * stride + KH - 2 * padding
    Wo = (W - 1) * stride + KW - 2 * padding
    full = np.zeros((B, Cout, Ho + 2 * padding, Wo + 2 * padding), np.float32)
    for n in range(B):
        for ci in range(Cin):
            for ih in range(H):
                for iw in range(W):
                    full[n, :, ih * stride:ih * stride + KH, iw * stride:iw * stride + KW] += (
                        x_nchw[n, ci, ih, iw] * w[ci]
                    )
    out = full[:, :, padding:padding + Ho, padding:padding + Wo]
    return out + b.reshape(1, -1, 1, 1)


def _ref_decoder(p, x, x_pose, unflat_shape):
    z = np.concatenate([x_pose, x], axis=-1)
    h = z @ p["lin_w"] + p["lin_b"]
    h = h.reshape(z.shape[0], *unflat_shape)
    h = np.maximum(_ref_convT(h, p["ct0_w"], p["ct0_b"], 2, 0), 0.0)
    h = np.maximum(_ref_convT(h, p["ct1_w"], p["ct1_b"], 2, 1), 0.0)
    return _ref_convT(h, p["ct2_w"], p["ct2_b"], 2, 1)


# --------------------------------- main --------------------------------------
if __name__ == "__main__":
    filters = [8, 16, 32]
    latent_dims, pose_dims = 8, 4
    unflat_shape = (filters[-1], 3, 3)
    flat_shape = int(np.prod(unflat_shape))
    B = 2

    key = jax.random.PRNGKey(0)
    ks = jax.random.split(key, 10)
    rnd = lambda k, s: 0.1 * jax.random.normal(k, s, jnp.float32)

    params = {
        "lin_w": rnd(ks[0], (latent_dims + pose_dims, flat_shape)),
        "lin_b": rnd(ks[1], (flat_shape,)),
        "ct0_w": rnd(ks[2], (filters[2], filters[1], 3, 3)),   # ConvT(32->16, k3,s2,p0)
        "ct0_b": rnd(ks[3], (filters[1],)),
        "ct1_w": rnd(ks[4], (filters[1], filters[0], 3, 3)),   # ConvT(16->8,  k3,s2,p1)
        "ct1_b": rnd(ks[5], (filters[0],)),
        "ct2_w": rnd(ks[6], (filters[0], 1, 2, 2)),            # ConvT(8->1,   k2,s2,p1)
        "ct2_b": rnd(ks[7], (1,)),
    }
    x = rnd(ks[8], (B, latent_dims))
    x_pose = rnd(ks[9], (B, pose_dims))

    forward = build_decoder(params, B, unflat_shape, pose_dims)   # constants built once here
    out = jax.block_until_ready(forward(x, x_pose))
    assert out.shape == (B, 1, 24, 24), out.shape

    params_np = {k: np.asarray(v) for k, v in params.items()}
    ref = _ref_decoder(params_np, np.asarray(x), np.asarray(x_pose), unflat_shape)
    # Tolerance loosened vs. the all-f32 version: Wcat is stored in bf16 and
    # activations are cast to bf16 at the MXU (accumulation stays f32).
    np.testing.assert_allclose(np.asarray(out), ref, rtol=2e-2, atol=2e-2)

    print("KERNEL_OK")
</pallas_src>

<mosaic_0001>
module attributes {stable_mosaic.version = 11 : i64} {
  func.func @_decoder_kernel(%arg0: memref<2x12xf32, #tpu.memory_space<vmem>>, %arg1: memref<12x384xf32, #tpu.memory_space<vmem>>, %arg2: memref<1x384xf32, #tpu.memory_space<vmem>>, %arg3: memref<128x384xbf16, #tpu.memory_space<vmem>>, %arg4: memref<3x16x8xbf16, #tpu.memory_space<vmem>>, %arg5: memref<1x128xf32, #tpu.memory_space<vmem>>, %arg6: memref<128x384xbf16, #tpu.memory_space<vmem>>, %arg7: memref<3x32x16xbf16, #tpu.memory_space<vmem>>, %arg8: memref<1x128xf32, #tpu.memory_space<vmem>>, %arg9: memref<128x256xbf16, #tpu.memory_space<vmem>>, %arg10: memref<2x48x32xbf16, #tpu.memory_space<vmem>>, %arg11: memref<1x128xf32, #tpu.memory_space<vmem>>, %arg12: memref<48x128xf32, #tpu.memory_space<vmem>>) attributes {dimension_semantics = [], scalar_prefetch = 0 : i64, scratch_operands = 0 : i64, tpu.core_type = #tpu.core_type<tc>} {
    %c0 = arith.constant 0 : index
    %c0_0 = arith.constant 0 : index
    %0 = vector.load %arg0[%c0, %c0_0] : memref<2x12xf32, #tpu.memory_space<vmem>>, vector<2x12xf32>
    %c0_1 = arith.constant 0 : index
    %c0_2 = arith.constant 0 : index
    %1 = vector.load %arg1[%c0_1, %c0_2] : memref<12x384xf32, #tpu.memory_space<vmem>>, vector<12x384xf32>
    %cst = arith.constant dense<0.000000e+00> : vector<2x384xf32>
    %2 = tpu.matmul %0, %1, %cst {dimension_numbers = #tpu.dot_dimension_numbers<[1], [0], [0], [1], [0, 0, 1, 1], [], []>} : vector<2x12xf32>, vector<12x384xf32>, vector<2x384xf32> -> vector<2x384xf32>
    %c0_3 = arith.constant 0 : index
    %c0_4 = arith.constant 0 : index
    %3 = vector.load %arg2[%c0_3, %c0_4] : memref<1x384xf32, #tpu.memory_space<vmem>>, vector<1x384xf32>
    %4 = vector.broadcast %3 : vector<1x384xf32> to vector<2x384xf32>
    %5 = arith.addf %2, %4 : vector<2x384xf32>
    %6 = vector.shape_cast %5 : vector<2x384xf32> to vector<6x128xf32>
    %cst_5 = arith.constant 0.000000e+00 : f32
    %7 = vector.broadcast %cst_5 : f32 to vector<2x128xf32>
    %8 = tpu.concatenate %6, %7 in 0 : vector<6x128xf32>, vector<2x128xf32> -> vector<8x128xf32>
    %9 = arith.truncf %8 : vector<8x128xf32> to vector<8x128xbf16>
    %c0_6 = arith.constant 0 : index
    %c0_7 = arith.constant 0 : index
    %10 = vector.load %arg3[%c0_6, %c0_7] : memref<128x384xbf16, #tpu.memory_space<vmem>>, vector<128x384xbf16>
    %cst_8 = arith.constant dense<0.000000e+00> : vector<8x384xf32>
    %11 = tpu.matmul %9, %10, %cst_8 {dimension_numbers = #tpu.dot_dimension_numbers<[1], [0], [0], [1], [0, 0, 1, 1], [], []>} : vector<8x128xbf16>, vector<128x384xbf16>, vector<8x384xf32> -> vector<8x384xf32>
    %c0_9 = arith.constant 0 : index
    %c0_10 = arith.constant 0 : index
    %c0_11 = arith.constant 0 : index
    %12 = vector.load %arg4[%c0_9, %c0_10, %c0_11] : memref<3x16x8xbf16, #tpu.memory_space<vmem>>, vector<1x16x8xbf16>
    %13 = vector.shape_cast %12 : vector<1x16x8xbf16> to vector<16x8xbf16>
    %14 = arith.extf %13 : vector<16x8xbf16> to vector<16x8xf32>
    %15 = vector.extract_strided_slice %11 {offsets = [0, 0], sizes = [8, 128], strides = [1, 1]} : vector<8x384xf32> to vector<8x128xf32>
    %cst_12 = arith.constant dense<0.000000e+00> : vector<16x128xf32>
    %16 = tpu.matmul %14, %15, %cst_12 {dimension_numbers = #tpu.dot_dimension_numbers<[1], [0], [0], [1], [0, 0, 1, 1], [], []>} : vector<16x8xf32>, vector<8x128xf32>, vector<16x128xf32> -> vector<16x128xf32>
    %c1 = arith.constant 1 : index
    %c0_13 = arith.constant 0 : index
    %c0_14 = arith.constant 0 : index
    %17 = vector.load %arg4[%c1, %c0_13, %c0_14] : memref<3x16x8xbf16, #tpu.memory_space<vmem>>, vector<1x16x8xbf16>
    %18 = vector.shape_cast %17 : vector<1x16x8xbf16> to vector<16x8xbf16>
    %19 = arith.extf %18 : vector<16x8xbf16> to vector<16x8xf32>
    %20 = vector.extract_strided_slice %11 {offsets = [0, 128], sizes = [8, 128], strides = [1, 1]} : vector<8x384xf32> to vector<8x128xf32>
    %cst_15 = arith.constant dense<0.000000e+00> : vector<16x128xf32>
    %21 = tpu.matmul %19, %20, %cst_15 {dimension_numbers = #tpu.dot_dimension_numbers<[1], [0], [0], [1], [0, 0, 1, 1], [], []>} : vector<16x8xf32>, vector<8x128xf32>, vector<16x128xf32> -> vector<16x128xf32>
    %22 = arith.addf %16, %21 : vector<16x128xf32>
    %c2 = arith.constant 2 : index
    %c0_16 = arith.constant 0 : index
    %c0_17 = arith.constant 0 : index
    %23 = vector.load %arg4[%c2, %c0_16, %c0_17] : memref<3x16x8xbf16, #tpu.memory_space<vmem>>, vector<1x16x8xbf16>
    %24 = vector.shape_cast %23 : vector<1x16x8xbf16> to vector<16x8xbf16>
    %25 = arith.extf %24 : vector<16x8xbf16> to vector<16x8xf32>
    %26 = vector.extract_strided_slice %11 {offsets = [0, 256], sizes = [8, 128], strides = [1, 1]} : vector<8x384xf32> to vector<8x128xf32>
    %cst_18 = arith.constant dense<0.000000e+00> : vector<16x128xf32>
    %27 = tpu.matmul %25, %26, %cst_18 {dimension_numbers = #tpu.dot_dimension_numbers<[1], [0], [0], [1], [0, 0, 1, 1], [], []>} : vector<16x8xf32>, vector<8x128xf32>, vector<16x128xf32> -> vector<16x128xf32>
    %28 = arith.addf %22, %27 : vector<16x128xf32>
    %c0_19 = arith.constant 0 : index
    %c0_20 = arith.constant 0 : index
    %29 = vector.load %arg5[%c0_19, %c0_20] : memref<1x128xf32, #tpu.memory_space<vmem>>, vector<1x128xf32>
    %30 = vector.broadcast %29 : vector<1x128xf32> to vector<16x128xf32>
    %31 = arith.addf %28, %30 : vector<16x128xf32>
    %cst_21 = arith.constant 0.000000e+00 : f32
    %32 = vector.broadcast %cst_21 : f32 to vector<16x128xf32>
    %33 = arith.maximumf %31, %32 : vector<16x128xf32>
    %34 = arith.truncf %33 : vector<16x128xf32> to vector<16x128xbf16>
    %c0_22 = arith.constant 0 : index
    %c0_23 = arith.constant 0 : index
    %35 = vector.load %arg6[%c0_22, %c0_23] : memref<128x384xbf16, #tpu.memory_space<vmem>>, vector<128x384xbf16>
    %cst_24 = arith.constant dense<0.000000e+00> : vector<16x384xf32>
    %36 = tpu.matmul %34, %35, %cst_24 {dimension_numbers = #tpu.dot_dimension_numbers<[1], [0], [0], [1], [0, 0, 1, 1], [], []>} : vector<16x128xbf16>, vector<128x384xbf16>, vector<16x384xf32> -> vector<16x384xf32>
    %c0_25 = arith.constant 0 : index
    %c0_26 = arith.constant 0 : index
    %c0_27 = arith.constant 0 : index
    %37 = vector.load %arg7[%c0_25, %c0_26, %c0_27] : memref<3x32x16xbf16, #tpu.memory_space<vmem>>, vector<1x32x16xbf16>
    %38 = vector.shape_cast %37 : vector<1x32x16xbf16> to vector<32x16xbf16>
    %39 = arith.extf %38 : vector<32x16xbf16> to vector<32x16xf32>
    %40 = vector.extract_strided_slice %36 {offsets = [0, 0], sizes = [16, 128], strides = [1, 1]} : vector<16x384xf32> to vector<16x128xf32>
    %cst_28 = arith.constant dense<0.000000e+00> : vector<32x128xf32>
    %41 = tpu.matmul %39, %40, %cst_28 {dimension_numbers = #tpu.dot_dimension_numbers<[1], [0], [0], [1], [0, 0, 1, 1], [], []>} : vector<32x16xf32>, vector<16x128xf32>, vector<32x128xf32> -> vector<32x128xf32>
    %c1_29 = arith.constant 1 : index
    %c0_30 = arith.constant 0 : index
    %c0_31 = arith.constant 0 : index
    %42 = vector.load %arg7[%c1_29, %c0_30, %c0_31] : memref<3x32x16xbf16, #tpu.memory_space<vmem>>, vector<1x32x16xbf16>
    %43 = vector.shape_cast %42 : vector<1x32x16xbf16> to vector<32x16xbf16>
    %44 = arith.extf %43 : vector<32x16xbf16> to vector<32x16xf32>
    %45 = vector.extract_strided_slice %36 {offsets = [0, 128], sizes = [16, 128], strides = [1, 1]} : vector<16x384xf32> to vector<16x128xf32>
    %cst_32 = arith.constant dense<0.000000e+00> : vector<32x128xf32>
    %46 = tpu.matmul %44, %45, %cst_32 {dimension_numbers = #tpu.dot_dimension_numbers<[1], [0], [0], [1], [0, 0, 1, 1], [], []>} : vector<32x16xf32>, vector<16x128xf32>, vector<32x128xf32> -> vector<32x128xf32>
    %47 = arith.addf %41, %46 : vector<32x128xf32>
    %c2_33 = arith.constant 2 : index
    %c0_34 = arith.constant 0 : index
    %c0_35 = arith.constant 0 : index
    %48 = vector.load %arg7[%c2_33, %c0_34, %c0_35] : memref<3x32x16xbf16, #tpu.memory_space<vmem>>, vector<1x32x16xbf16>
    %49 = vector.shape_cast %48 : vector<1x32x16xbf16> to vector<32x16xbf16>
    %50 = arith.extf %49 : vector<32x16xbf16> to vector<32x16xf32>
    %51 = vector.extract_strided_slice %36 {offsets = [0, 256], sizes = [16, 128], strides = [1, 1]} : vector<16x384xf32> to vector<16x128xf32>
    %cst_36 = arith.constant dense<0.000000e+00> : vector<32x128xf32>
    %52 = tpu.matmul %50, %51, %cst_36 {dimension_numbers = #tpu.dot_dimension_numbers<[1], [0], [0], [1], [0, 0, 1, 1], [], []>} : vector<32x16xf32>, vector<16x128xf32>, vector<32x128xf32> -> vector<32x128xf32>
    %53 = arith.addf %47, %52 : vector<32x128xf32>
    %c0_37 = arith.constant 0 : index
    %c0_38 = arith.constant 0 : index
    %54 = vector.load %arg8[%c0_37, %c0_38] : memref<1x128xf32, #tpu.memory_space<vmem>>, vector<1x128xf32>
    %55 = vector.broadcast %54 : vector<1x128xf32> to vector<32x128xf32>
    %56 = arith.addf %53, %55 : vector<32x128xf32>
    %cst_39 = arith.constant 0.000000e+00 : f32
    %57 = vector.broadcast %cst_39 : f32 to vector<32x128xf32>
    %58 = arith.maximumf %56, %57 : vector<32x128xf32>
    %59 = arith.truncf %58 : vector<32x128xf32> to vector<32x128xbf16>
    %c0_40 = arith.constant 0 : index
    %c0_41 = arith.constant 0 : index
    %60 = vector.load %arg9[%c0_40, %c0_41] : memref<128x256xbf16, #tpu.memory_space<vmem>>, vector<128x256xbf16>
    %cst_42 = arith.constant dense<0.000000e+00> : vector<32x256xf32>
    %61 = tpu.matmul %59, %60, %cst_42 {dimension_numbers = #tpu.dot_dimension_numbers<[1], [0], [0], [1], [0, 0, 1, 1], [], []>} : vector<32x128xbf16>, vector<128x256xbf16>, vector<32x256xf32> -> vector<32x256xf32>
    %c0_43 = arith.constant 0 : index
    %c0_44 = arith.constant 0 : index
    %c0_45 = arith.constant 0 : index
    %62 = vector.load %arg10[%c0_43, %c0_44, %c0_45] : memref<2x48x32xbf16, #tpu.memory_space<vmem>>, vector<1x48x32xbf16>
    %63 = vector.shape_cast %62 : vector<1x48x32xbf16> to vector<48x32xbf16>
    %64 = arith.extf %63 : vector<48x32xbf16> to vector<48x32xf32>
    %65 = vector.extract_strided_slice %61 {offsets = [0, 0], sizes = [32, 128], strides = [1, 1]} : vector<32x256xf32> to vector<32x128xf32>
    %cst_46 = arith.constant dense<0.000000e+00> : vector<48x128xf32>
    %66 = tpu.matmul %64, %65, %cst_46 {dimension_numbers = #tpu.dot_dimension_numbers<[1], [0], [0], [1], [0, 0, 1, 1], [], []>} : vector<48x32xf32>, vector<32x128xf32>, vector<48x128xf32> -> vector<48x128xf32>
    %c1_47 = arith.constant 1 : index
    %c0_48 = arith.constant 0 : index
    %c0_49 = arith.constant 0 : index
    %67 = vector.load %arg10[%c1_47, %c0_48, %c0_49] : memref<2x48x32xbf16, #tpu.memory_space<vmem>>, vector<1x48x32xbf16>
    %68 = vector.shape_cast %67 : vector<1x48x32xbf16> to vector<48x32xbf16>
    %69 = arith.extf %68 : vector<48x32xbf16> to vector<48x32xf32>
    %70 = vector.extract_strided_slice %61 {offsets = [0, 128], sizes = [32, 128], strides = [1, 1]} : vector<32x256xf32> to vector<32x128xf32>
    %cst_50 = arith.constant dense<0.000000e+00> : vector<48x128xf32>
    %71 = tpu.matmul %69, %70, %cst_50 {dimension_numbers = #tpu.dot_dimension_numbers<[1], [0], [0], [1], [0, 0, 1, 1], [], []>} : vector<48x32xf32>, vector<32x128xf32>, vector<48x128xf32> -> vector<48x128xf32>
    %72 = arith.addf %66, %71 : vector<48x128xf32>
    %c0_51 = arith.constant 0 : index
    %c0_52 = arith.constant 0 : index
    %73 = vector.load %arg11[%c0_51, %c0_52] : memref<1x128xf32, #tpu.memory_space<vmem>>, vector<1x128xf32>
    %74 = vector.broadcast %73 : vector<1x128xf32> to vector<48x128xf32>
    %75 = arith.addf %72, %74 : vector<48x128xf32>
    %c0_53 = arith.constant 0 : index
    %c0_54 = arith.constant 0 : index
    %76 = vector.load %arg12[%c0_53, %c0_54] : memref<48x128xf32, #tpu.memory_space<vmem>>, vector<48x128xf32>
    tpu.vector_store %arg12[%c0_53, %c0_54], %75 {strides = array<i32>} : memref<48x128xf32, #tpu.memory_space<vmem>>, vector<48x128xf32>,
    return
  }
}

</mosaic_0001>

<bundles_post_ra>
// kernel: forward.1
= control target key start
LH: loop header
LB: loop body
LE: loop exit
PB: predicated region body
PF: predicated region fallthrough
CT: control target
= control target key end

     0   :  { %vm71_vm0 = vcmask 1043456   ;;  %vm2342_vm1 = vmmov 1   ;;  %v2343_v7 = vmov 0.0   ;;  %vm67_vm3 = vcmask 97280   ;;  %s2766_s0 = inlined_call_operand.vmem [shape: f32[2,12], index: 0, kind: input, shape index: {}]   ;;  %s2767_s1 = inlined_call_operand.vmem [shape: f32[12,384], index: 1, kind: input, shape index: {}]   ;;  %s2768_s2 = inlined_call_operand.vmem [shape: f32[1,384], index: 2, kind: input, shape index: {}]   ;;  %s2769_s3 = inlined_call_operand.vmem [shape: bf16[128,384], index: 3, kind: input, shape index: {}]   ;;  %s2770_s4 = inlined_call_operand.vmem [shape: bf16[3,16,8], index: 4, kind: input, shape index: {}]   ;;  %s2771_s5 = inlined_call_operand.vmem [shape: f32[1,128], index: 5, kind: input, shape index: {}]   ;;  %s2772_s6 = inlined_call_operand.vmem [shape: bf16[128,384], index: 6, kind: input, shape index: {}]   ;;  %s2773_s7 = inlined_call_operand.vmem [shape: bf16[3,32,16], index: 7, kind: input, shape index: {}]   ;;  %s2774_s8 = inlined_call_operand.vmem [shape: f32[1,128], index: 8, kind: input, shape index: {}]   ;;  %s2775_s9 = inlined_call_operand.vmem [shape: bf16[128,256], index: 9, kind: input, shape index: {}]   ;;  %s2776_s10 = inlined_call_operand.vmem [shape: bf16[2,48,32], index: 10, kind: input, shape index: {}]   ;;  %s2777_s11 = inlined_call_operand.vmem [shape: f32[1,128], index: 11, kind: input, shape index: {}]   ;;  %s2778_s12 = inlined_call_operand.hbm [shape: f32[48,128], index: 12, kind: output, shape index: {}]  }
   0x1   :  { %v45_v0 = vld [vmem:[%s2767_s1 + $0x8] sm:$0xff]  ;;  %v48_v1 = vld [vmem:[%s2767_s1 + $0x20] sm:$0xf]  ;;  %vm2424_vm2 = vmpackc.low %vm71_vm0, %vm2342_vm1  ;;  %145 = vmatprep.mubr.f32.mxu1 %v2343_v7  ;;  %v2344_v14 = vmov 0.0|0.0   ;;  %vm2345_vm4 = vmmov 0  }
   0x2   :  { %v44_v2 = vld [vmem:[%s2767_s1] sm:$0xff]  ;;  %v2166_v3 = vpack.c.bf16 %v48_v1, %v45_v0  ;;  %v47_v5 = vld [vmem:[%s2767_s1 + $0x18] sm:$0xf]  ;;  %v46_v9 = vld [vmem:[%s2767_s1 + $0x10] sm:$0xff] }
   0x3   :  { %v2169_v6 = vpack.c.bf16 %v47_v5, %v44_v2  ;;  %v43_v8 = vld [vmem:[%s2766_s0] sm:$0x3]  ;;  %v49_v10 = vld [vmem:[%s2767_s1 + $0x28] sm:$0xf]  ;;  %v2230_v11 = vld [vmem:[%s2769_s3 + $0x4] ss:$12 sps:$4 sm:$0xff]  }
   0x4   :  { %2168 = vmatprep.subr.msk.bf16.mxu1 %vm2424_vm2, %v2166_v3  ;;  %v2232_v12 = vld [vmem:[%s2769_s3] ss:$12 sps:$4 sm:$0xff]   ;;  %v2173_v13 = vpack.c.bf16 %v49_v10, %v46_v9  ;;  %402 = vmatprep.subr.bf16.mxu0 %v2230_v11  ;;  %v2234_v15 = vld [vmem:[%s2769_s3 + $0x1c] ss:$12 sps:$4 sm:$0xff]   ;;  %v2236_v16 = vld [vmem:[%s2769_s3 + $0x18] ss:$12 sps:$4 sm:$0xff]  }
   0x5   :  { %2171 = vmatpush1.bf16.msk.msra.mxu1 %vm2424_vm2, %v2169_v6  ;;  %403 = vmatpush1.bf16.msra.mxu0 %v2232_v12  ;;  %v2233_v17 = vld [vmem:[%s2769_s3 + $0x8] ss:$12 sps:$4 sm:$0xff]   ;;  %v2237_v19 = vld [vmem:[%s2769_s3 + $0x20] ss:$12 sps:$4 sm:$0xff]   ;;  %v2240_v20 = vld [vmem:[%s2769_s3 + $0x30] ss:$12 sps:$4 sm:$0xff]  }
   0x6   :  { %2172 = vmatprep.subr.bf16.mxu1 %v2344_v14  ;;  %404 = vmatprep.subr.bf16.mxu0 %v2234_v15  ;;  %v2238_v18 = vld [vmem:[%s2769_s3 + $0x34] ss:$12 sps:$4 sm:$0xff]   ;;  %v2242_v21 = vld [vmem:[%s2769_s3 + $0x4c] ss:$12 sps:$4 sm:$0xff]   ;;  %v2246_v23 = vld [vmem:[%s2769_s3 + $0x64] ss:$12 sps:$4 sm:$0xff]  }
   0x7   :  { %v2244_v22 = vld [vmem:[%s2769_s3 + $0x48] ss:$12 sps:$4 sm:$0xff]   ;;  %v2241_v24 = vld [vmem:[%s2769_s3 + $0x38] ss:$12 sps:$4 sm:$0xff]   ;;  %v2245_v25 = vld [vmem:[%s2769_s3 + $0x50] ss:$12 sps:$4 sm:$0xff]  }
   0x8   :  { %1776 = vmatmul.mubr.msk.f32.vlgmr.msra.gmra.mrb[0].mxu1 %vm67_vm3, %v43_v8 }
   0x9   :  { %2175 = vmatpush3.bf16.msk.msra.mxu1 %vm2424_vm2, %v2173_v13  ;;  %2044 = vmatprep.mubr.msk.f32.mxu1 %vm2345_vm4, %v2343_v7 }
   0xa   :  { %2047 = vmatprep.subr.bf16.mxu1 %v2343_v7  ;;  %405 = vmatpush1.bf16.msra.mxu0 %v2236_v16 }
   0xb   :  { %406 = vmatprep.subr.bf16.mxu0 %v2238_v18 }
   0xc   :  { %2045 = vmatmul.mubr.msk.f32.vlgmr.msra.gmra.mrb[2].mxu1 %vm67_vm3, %v43_v8 }
   0xd   :  { %2048 = vmatpush3.bf16.msra.mxu1 %v2233_v17  ;;  %2063 = vmatprep.mubr.msk.bf16.mxu1 %vm2345_vm4, %v2343_v7 }
   0xe   :  { %2049 = vmatprep.subr.bf16.mxu1 %v2343_v7  ;;  %407 = vmatpush1.bf16.msra.mxu0 %v2240_v20 }
   0xf   :  { %408 = vmatprep.subr.bf16.mxu0 %v2242_v21 }
  0x11   :  { %2050 = vmatpush3.bf16.msra.mxu1 %v2237_v19 }
  0x12   :  { %2051 = vmatprep.subr.bf16.mxu1 %v2343_v7  ;;  %409 = vmatpush1.bf16.msra.mxu0 %v2244_v22 }
  0x13   :  { %410 = vmatprep.subr.bf16.mxu0 %v2246_v23 }
  0x15   :  { %2052 = vmatpush3.bf16.msra.mxu1 %v2241_v24 }
  0x16   :  { %2053 = vmatprep.subr.bf16.mxu1 %v2343_v7 }
  0x19   :  { %2054 = vmatpush3.bf16.msra.mxu1 %v2245_v25 }
  0x1a   :  { %2055 = vmatprep.subr.bf16.mxu1 %v2343_v7 }
  0x1b   :  { %17 = vsyncpa [#allocation3], 0  ;;  %v2248_v26 = vld [vmem:[%s2769_s3 + $0x60] ss:$12 sps:$4 sm:$0xff]   ;;  %v2249_v27 = vld [vmem:[%s2769_s3 + $0x68] ss:$12 sps:$4 sm:$0xff]   ;;  %v52_v38 = vlaneseq }
  0x1c   :  { %411 = vmatpush1.bf16.msra.mxu0 %v2248_v26  ;;  %v2250_v28 = vld [vmem:[%s2769_s3 + $0x7c] ss:$12 sps:$4 sm:$0xff]   ;;  %v2252_v29 = vld [vmem:[%s2769_s3 + $0x78] ss:$12 sps:$4 sm:$0xff]   ;;  %v2253_v30 = vld [vmem:[%s2769_s3 + $0x80] ss:$12 sps:$4 sm:$0xff]  }
  0x1d   :  { %2056 = vmatpush3.bf16.msra.mxu1 %v2249_v27  ;;  %412 = vmatprep.subr.bf16.mxu0 %v2250_v28  ;;  %v2254_v31 = vld [vmem:[%s2769_s3 + $0x94] ss:$12 sps:$4 sm:$0xff]   ;;  %v2256_v32 = vld [vmem:[%s2769_s3 + $0x90] ss:$12 sps:$4 sm:$0xff]   ;;  %v2257_v33 = vld [vmem:[%s2769_s3 + $0x98] ss:$12 sps:$4 sm:$0xff]  }
  0x1e   :  { %2057 = vmatprep.subr.bf16.mxu1 %v2343_v7  ;;  %v2258_v34 = vld [vmem:[%s2769_s3 + $0xac] ss:$12 sps:$4 sm:$0xff]   ;;  %v2260_v35 = vld [vmem:[%s2769_s3 + $0xa8] ss:$12 sps:$4 sm:$0xff]   ;;  %v2261_v36 = vld [vmem:[%s2769_s3 + $0xb0] ss:$12 sps:$4 sm:$0xff]  }
  0x1f   :  { %v2346_v37 = vmov 0   ;;  %v53_v39 = vshrl.u32 %v52_v38, 7  ;;  %v50_v41 = vld [vmem:[%s2768_s2] sm:$0x7]  ;;  %vm222_vm5 = vcmask 1040384   ;;  %vm225_vm6 = vcmask 1041409  }
  0x20   :  { %413 = vmatpush1.bf16.msra.mxu0 %v2252_v29  ;;  %434 = vmatprep.mubr.bf16.mxu0 %v2346_v37  ;;  %vm228_vm7 = vcmask 1042434   ;;  %vm231_vm8 = vcmask 1043459   ;;  %vm234_vm9 = vcmask 1044484   ;;  %vm237_vm10 = vcmask 1045509   ;;  %v1960_v2 = vld [vmem:[%s2770_s4 + $0x8] sm:$0xff]   ;;  %v1901_v17 = vld [vmem:[%s2770_s4] sm:$0xff]  }
  0x21   :  { %2058 = vmatpush3.bf16.msra.mxu1 %v2253_v30  ;;  %414 = vmatprep.subr.bf16.mxu0 %v2254_v31  ;;  %v54_v40 = vsub.s32 0, %v53_v39  ;;  %v58_v42 = vsub.s32 1, %v53_v39  ;;  %v62_v44 = vsub.s32 2, %v53_v39  ;;  %vm239_vm11 = vcmask 1045504   ;;  %v2262_v4 = vld [vmem:[%s2772_s6] ss:$12 sps:$4 sm:$0xff]  }
  0x22   :  { %2059 = vmatprep.subr.bf16.mxu1 %v2343_v7  ;;  %vm1803_vm12 = vmpackc.low %vm239_vm11, %vm239_vm11  ;;  %v1906_v3 = vunpack.c.l.bf16 %v1960_v2  ;;  %vm492_vm13 = vcmask 64512   ;;  %v2264_v5 = vld [vmem:[%s2772_s6 + $0x4] ss:$12 sps:$4 sm:$0xff]   ;;  %v2268_v6 = vld [vmem:[%s2772_s6 + $0x1c] ss:$12 sps:$4 sm:$0xff]   ;;  %v1907_v20 = vunpack.c.h.bf16 %v1960_v2  ;;  %v1902_v23 = vunpack.c.l.bf16 %v1901_v17 }
  0x23   :  { %v55_v43 = vrot.slane %v50_v41, %v54_v40  ;;  %v59_v45 = vrot.slane %v50_v41, %v58_v42  ;;  %v63_v49 = vrot.slane %v50_v41, %v62_v44  ;;  %v2266_v8 = vld [vmem:[%s2772_s6 + $0x18] ss:$12 sps:$4 sm:$0xff]   ;;  %v2272_v9 = vld [vmem:[%s2772_s6 + $0x34] ss:$12 sps:$4 sm:$0xff]   ;;  %v2270_v10 = vld [vmem:[%s2772_s6 + $0x30] ss:$12 sps:$4 sm:$0xff]   ;;  %v1903_v29 = vunpack.c.h.bf16 %v1901_v17 }
  0x24   :  { %415 = vmatpush1.bf16.msra.mxu0 %v2256_v32  ;;  %v2276_v11 = vld [vmem:[%s2772_s6 + $0x4c] ss:$12 sps:$4 sm:$0xff]   ;;  %v2274_v12 = vld [vmem:[%s2772_s6 + $0x48] ss:$12 sps:$4 sm:$0xff]   ;;  %v2280_v13 = vld [vmem:[%s2772_s6 + $0x64] ss:$12 sps:$4 sm:$0xff]  }
  0x25   :  { %2060 = vmatpush3.bf16.msra.mxu1 %v2257_v33  ;;  %416 = vmatprep.subr.bf16.mxu0 %v2258_v34  ;;  %v2278_v14 = vld [vmem:[%s2772_s6 + $0x60] ss:$12 sps:$4 sm:$0xff]   ;;  %v2284_v15 = vld [vmem:[%s2772_s6 + $0x7c] ss:$12 sps:$4 sm:$0xff]   ;;  %v2282_v16 = vld [vmem:[%s2772_s6 + $0x78] ss:$12 sps:$4 sm:$0xff]  }
  0x26   :  { %2061 = vmatprep.subr.bf16.mxu1 %v2343_v7  ;;  %v1961_v28 = vld [vmem:[%s2770_s4 + $0x10] sm:$0xff]   ;;  %v2269_v33 = vld [vmem:[%s2772_s6 + $0x20] ss:$12 sps:$4 sm:$0xff]   ;;  %v2273_v34 = vld [vmem:[%s2772_s6 + $0x38] ss:$12 sps:$4 sm:$0xff]   ;;  %vm1016_vm14 = vcmask 130048  }
  0x27   :  { %v1910_v30 = vunpack.c.l.bf16 %v1961_v28  ;;  %v1911_v31 = vunpack.c.h.bf16 %v1961_v28  ;;  %v2265_v32 = vld [vmem:[%s2772_s6 + $0x8] ss:$12 sps:$4 sm:$0xff]   ;;  %v2285_v38 = vld [vmem:[%s2772_s6 + $0x80] ss:$12 sps:$4 sm:$0xff]   ;;  %v2286_v40 = vld [vmem:[%s2772_s6 + $0x90] ss:$12 sps:$4 sm:$0xff]  }
  0x28   :  { %417 = vmatpush1.bf16.msra.mxu0 %v2260_v35  ;;  %v2277_v35 = vld [vmem:[%s2772_s6 + $0x50] ss:$12 sps:$4 sm:$0xff]   ;;  %v2288_v39 = vld [vmem:[%s2772_s6 + $0x94] ss:$12 sps:$4 sm:$0xff]   ;;  %v2289_v41 = vld [vmem:[%s2772_s6 + $0x98] ss:$12 sps:$4 sm:$0xff]  }
  0x29   :  { %2062 = vmatpush3.bf16.msra.mxu1 %v2261_v36  ;;  %v2281_v36 = vld [vmem:[%s2772_s6 + $0x68] ss:$12 sps:$4 sm:$0xff]   ;;  %v2292_v42 = vld [vmem:[%s2772_s6 + $0xac] ss:$12 sps:$4 sm:$0xff]   ;;  %v2293_v44 = vld [vmem:[%s2772_s6 + $0xb0] ss:$12 sps:$4 sm:$0xff]  }
  0x2a   :  { %915 = vmatprep.subr.bf16.mxu1 %v2264_v5  ;;  %v1913_v17 = vld [vmem:[%s2773_s7] sm:$0xff]   ;;  %vm1512_vm15 = vcmask 261120  }
  0xdb   :  { %v147_v46 = vpop.f32.mrb[0].mxu1 }
  0xdc   :  { %v148_v47 = vadd.f32 %v147_v46, %v55_v43  ;;  %v149_v48 = vpop.f32.mrb[1].mxu1  ;;  %v2290_v43 = vld [vmem:[%s2772_s6 + $0xa8] ss:$12 sps:$4 sm:$0xff]  }
  0xdd   :  { %v150_v50 = vadd.f32 %v149_v48, %v59_v45  ;;  %v1819_v45 = vld [vmem:[%s2771_s5] ss:$0 sm:$0xff] }
  0xde   :  { %v223_v53 = vsel %vm222_vm5, %v148_v47, 0.0  ;;  %v230_v58 = vrot.slane %v148_v47, 6 }
  0xdf   :  { %v224_v51 = vrot.slane %v150_v50, 7  ;;  %v218_v52 = vpop.f32.mrb[2].mxu1  ;;  %v233_v59 = vrot.slane %v150_v50, 5 }
  0xe0   :  { %v219_v54 = vadd.f32 %v218_v52, %v63_v49  ;;  %v2046_v55 = vpop.f32.mrb[3].mxu1  ;;  %v1963_v52 = vld [vmem:[%s2773_s7 + $0x10] sm:$0xff]  }
  0xe1   :  { %v226_v56 = vsel %vm225_vm6, %v224_v51, %v223_v53  ;;  %v1922_v53 = vunpack.c.l.bf16 %v1963_v52  ;;  %v2296_v55 = vld [vmem:[%s2775_s9 + $0x4] ss:$8 sps:$4 sm:$0xff]  }
  0xe2   :  { %v227_v57 = vrot.slane %v219_v54, 6  ;;  %v236_v62 = vrot.slane %v219_v54, 4  ;;  %v2294_v54 = vld [vmem:[%s2775_s9] ss:$8 sps:$4 sm:$0xff]  }
  0xe4   :  { %v229_v60 = vsel %vm228_vm7, %v227_v57, %v226_v56  ;;  %v2299_v56 = vld [vmem:[%s2775_s9 + $0x14] ss:$8 sps:$4 sm:$0xff]   ;;  %v2297_v57 = vld [vmem:[%s2775_s9 + $0x10] ss:$8 sps:$4 sm:$0xff]  }
  0xe5   :  { %v232_v61 = vsel %vm231_vm8, %v230_v58, %v229_v60  ;;  %v2302_v58 = vld [vmem:[%s2775_s9 + $0x24] ss:$8 sps:$4 sm:$0xff]   ;;  %v2305_v60 = vld [vmem:[%s2775_s9 + $0x34] ss:$8 sps:$4 sm:$0xff]  }
  0xe6   :  { %v235_v63 = vsel %vm234_vm9, %v233_v59, %v232_v61  ;;  %v2300_v59 = vld [vmem:[%s2775_s9 + $0x20] ss:$8 sps:$4 sm:$0xff]   ;;  %v2303_v61 = vld [vmem:[%s2775_s9 + $0x30] ss:$8 sps:$4 sm:$0xff]  }
  0xe7   :  { %v238_v0 = vsel %vm237_vm10, %v236_v62, %v235_v63  ;;  %v2308_v62 = vld [vmem:[%s2775_s9 + $0x44] ss:$8 sps:$4 sm:$0xff]   ;;  %v2306_v63 = vld [vmem:[%s2775_s9 + $0x40] ss:$8 sps:$4 sm:$0xff]  }
  0xe8   :  { %v1804_v1 = vpack.c.bf16 %v238_v0, %v238_v0  ;;  %v2311_v0 = vld [vmem:[%s2775_s9 + $0x54] ss:$8 sps:$4 sm:$0xff]  }
  0xea   :  { %1805 = vmatmul.mubr.msk.bf16.vlgmr.msra.gmra.mrb[0].mxu0 %vm1803_vm12, %v1804_v1  ;;  %2064 = vmatmul.mubr.msk.bf16.vlgmr.msra.gmra.mrb[4].mxu1 %vm1803_vm12, %v1804_v1  ;;  %v2309_v1 = vld [vmem:[%s2775_s9 + $0x50] ss:$8 sps:$4 sm:$0xff]  }
  0xeb   :  { %947 = vmatprep.mubr.bf16.mxu1 %v2346_v37  ;;  %2069 = vmatprep.mubr.msk.f32.mxu0 %vm492_vm13, %v1906_v3 }
  0xec   :  { %916 = vmatpush1.bf16.msra.mxu1 %v2262_v4 }
  0xed   :  { %917 = vmatprep.subr.bf16.mxu1 %v2268_v6 }
  0xf0   :  { %918 = vmatpush1.bf16.msra.mxu1 %v2266_v8 }
  0xf1   :  { %919 = vmatprep.subr.bf16.mxu1 %v2272_v9 }
  0xf4   :  { %920 = vmatpush1.bf16.msra.mxu1 %v2270_v10 }
  0xf5   :  { %921 = vmatprep.subr.bf16.mxu1 %v2276_v11 }
  0xf8   :  { %922 = vmatpush1.bf16.msra.mxu1 %v2274_v12 }
  0xf9   :  { %923 = vmatprep.subr.bf16.mxu1 %v2280_v13 }
  0xfc   :  { %924 = vmatpush1.bf16.msra.mxu1 %v2278_v14  ;;  %v1964_v14 = vld [vmem:[%s2773_s7 + $0x18] sm:$0xff]  }
  0xfd   :  { %925 = vmatprep.subr.bf16.mxu1 %v2284_v15  ;;  %v1923_v15 = vunpack.c.h.bf16 %v1963_v52 }
 0x100   :  { %926 = vmatpush1.bf16.msra.mxu1 %v2282_v16  ;;  %v1926_v16 = vunpack.c.l.bf16 %v1964_v14 }
 0x101   :  { %927 = vmatprep.subr.bf16.mxu1 %v2288_v39 }
 0x104   :  { %928 = vmatpush1.bf16.msra.mxu1 %v2286_v40 }
 0x105   :  { %929 = vmatprep.subr.bf16.mxu1 %v2292_v42 }
 0x108   :  { %930 = vmatpush1.bf16.msra.mxu1 %v2290_v43 }
 0x1bd   :  { %v436_v18 = vpop.f32.mrb[0].mxu0  ;;  %v477_v19 = vpop.f32.mrb[4].mxu1 }
 0x1be   :  { %v438_v21 = vpop.f32.mrb[1].mxu0  ;;  %v2065_v22 = vpop.f32.mrb[5].mxu1 }
 0x1bf   :  { %v440_v24 = vpop.f32.mrb[2].mxu0  ;;  %v480_v25 = vpop.f32.mrb[6].mxu1  ;;  %2067 = vmatprep.subr.mxu0 %v438_v21 }
 0x1c0   :  { %v441_v26 = vpop.f32.mrb[3].mxu0  ;;  %v2066_v27 = vpop.f32.mrb[7].mxu1  ;;  %2068 = vmatpush3.msra.mxu0 %v438_v21  ;;  %v1915_v21 = vunpack.c.h.bf16 %v1913_v17 }
 0x1c1   :  { %2070 = vmatmul.mubr.msk.f32.vlgmr.msra.gmra.mrb[4].mxu0 %vm492_vm13, %v1907_v20  ;;  %2072 = vmatprep.subr.mxu0 %v436_v18  ;;  %v1962_v20 = vld [vmem:[%s2773_s7 + $0x8] sm:$0xff]  }
 0x1c2   :  { %2073 = vmatpush3.msra.mxu0 %v436_v18  ;;  %2074 = vmatprep.mubr.msk.f32.mxu0 %vm492_vm13, %v1902_v23  ;;  %v1927_v18 = vunpack.c.h.bf16 %v1964_v14  ;;  %v1918_v22 = vunpack.c.l.bf16 %v1962_v20  ;;  %v1965_v23 = vld [vmem:[%s2773_s7 + $0x20] sm:$0xff]   ;;  %v1919_v24 = vunpack.c.h.bf16 %v1962_v20  ;;  %v1966_v26 = vld [vmem:[%s2773_s7 + $0x28] sm:$0xff]  }
 0x1c3   :  { %2077 = vmatprep.subr.mxu0 %v477_v19  ;;  %v1930_v25 = vunpack.c.l.bf16 %v1965_v23  ;;  %v1931_v27 = vunpack.c.h.bf16 %v1965_v23  ;;  %v1934_v28 = vunpack.c.l.bf16 %v1966_v26 }
 0x1c9   :  { %2075 = vmatmul.mubr.msk.f32.vlgmr.msra.gmra.mrb[4].mxu0 %vm492_vm13, %v1903_v29  ;;  %v1935_v29 = vunpack.c.h.bf16 %v1966_v26 }
 0x1ca   :  { %2078 = vmatpush3.msra.mxu0 %v477_v19  ;;  %2079 = vmatprep.mubr.msk.f32.mxu0 %vm492_vm13, %v1910_v30  ;;  %v1914_v19 = vunpack.c.l.bf16 %v1913_v17  ;;  %v2314_v30 = vld [vmem:[%s2775_s9 + $0x64] ss:$8 sps:$4 sm:$0xff]  }
 0x1cb   :  { %2082 = vmatprep.subr.bf16.mxu0 %v2343_v7 }
 0x1d1   :  { %2080 = vmatmul.mubr.msk.f32.vlgmr.msra.gmra.mrb[4].mxu0 %vm492_vm13, %v1911_v31  ;;  %v2312_v31 = vld [vmem:[%s2775_s9 + $0x60] ss:$8 sps:$4 sm:$0xff]  }
 0x1d2   :  { %2083 = vmatpush3.bf16.msra.mxu0 %v2265_v32  ;;  %2098 = vmatprep.mubr.msk.bf16.mxu0 %vm2345_vm4, %v2343_v7  ;;  %v2317_v32 = vld [vmem:[%s2775_s9 + $0x74] ss:$8 sps:$4 sm:$0xff]  }
 0x1d3   :  { %2084 = vmatprep.subr.bf16.mxu0 %v2343_v7 }
 0x1d6   :  { %2085 = vmatpush3.bf16.msra.mxu0 %v2269_v33  ;;  %v2315_v33 = vld [vmem:[%s2775_s9 + $0x70] ss:$8 sps:$4 sm:$0xff]  }
 0x1d7   :  { %2086 = vmatprep.subr.bf16.mxu0 %v2343_v7 }
 0x1da   :  { %2087 = vmatpush3.bf16.msra.mxu0 %v2273_v34  ;;  %v1864_v34 = vld [vmem:[%s2774_s8] ss:$0 sm:$0xff] }
 0x1db   :  { %2088 = vmatprep.subr.bf16.mxu0 %v2343_v7 }
 0x1de   :  { %2089 = vmatpush3.bf16.msra.mxu0 %v2277_v35 }
 0x1df   :  { %2090 = vmatprep.subr.bf16.mxu0 %v2343_v7 }
 0x1e2   :  { %2091 = vmatpush3.bf16.msra.mxu0 %v2281_v36 }
 0x1e3   :  { %2092 = vmatprep.subr.bf16.mxu0 %v2343_v7 }
 0x1e6   :  { %2093 = vmatpush3.bf16.msra.mxu0 %v2285_v38 }
 0x1e7   :  { %2094 = vmatprep.subr.bf16.mxu0 %v2343_v7 }
 0x1ea   :  { %2095 = vmatpush3.bf16.msra.mxu0 %v2289_v41 }
 0x1eb   :  { %2096 = vmatprep.subr.bf16.mxu0 %v2343_v7 }
 0x1ee   :  { %2097 = vmatpush3.bf16.msra.mxu0 %v2293_v44 }
 0x1ef   :  { %1434 = vmatprep.subr.bf16.mxu0 %v2296_v55 }
 0x2a4   :  { %v2081_v46 = vpop.f32.mrb[4].mxu0 }
 0x2a5   :  { %v751_v47 = vadd.f32 %v2081_v46, %v1819_v45  ;;  %v732_v48 = vpop.f32.mrb[5].mxu0 }
 0x2a6   :  { %v750_v49 = vadd.f32 %v1819_v45, %v732_v48 }
 0x2a7   :  { %v753_v7 = vmax.f32 %v751_v47, 0.0 }
 0x2a8   :  { %v752_v50 = vmax.f32 %v750_v49, 0.0 }
 0x2aa   :  { %v754_v51 = vpack.c.bf16 %v753_v7, %v752_v50  ;;  %v1969_v7 = vld [vmem:[%s2776_s10 + $0x18] sm:$0xff]  }
 0x2ab   :  { %v1950_v50 = vunpack.c.l.bf16 %v1969_v7 }
 0x2ac   :  { %948 = vmatmul.mubr.bf16.vlgmr.msra.gmra.mrb[8].mxu1 %v754_v51  ;;  %2099 = vmatmul.mubr.bf16.vlgmr.msra.gmra.mrb[8].mxu0 %v754_v51 }
 0x2ad   :  { %1466 = vmatprep.mubr.bf16.mxu0 %v2346_v37  ;;  %2106 = vmatprep.mubr.msk.f32.mxu1 %vm1016_vm14, %v1922_v53 }
 0x2ae   :  { %1435 = vmatpush1.bf16.msra.mxu0 %v2294_v54 }
 0x2af   :  { %1436 = vmatprep.subr.bf16.mxu0 %v2299_v56 }
 0x2b2   :  { %1437 = vmatpush1.bf16.msra.mxu0 %v2297_v57 }
 0x2b3   :  { %1438 = vmatprep.subr.bf16.mxu0 %v2302_v58 }
 0x2b6   :  { %1439 = vmatpush1.bf16.msra.mxu0 %v2300_v59 }
 0x2b7   :  { %1440 = vmatprep.subr.bf16.mxu0 %v2305_v60 }
 0x2ba   :  { %1441 = vmatpush1.bf16.msra.mxu0 %v2303_v61 }
 0x2bb   :  { %1442 = vmatprep.subr.bf16.mxu0 %v2308_v62  ;;  %v1970_v62 = vld [vmem:[%s2776_s10 + $0x20] sm:$0xff]  }
 0x2be   :  { %1443 = vmatpush1.bf16.msra.mxu0 %v2306_v63  ;;  %v1951_v63 = vunpack.c.h.bf16 %v1969_v7 }
 0x2bf   :  { %1444 = vmatprep.subr.bf16.mxu0 %v2311_v0  ;;  %v1954_v0 = vunpack.c.l.bf16 %v1970_v62 }
 0x2c2   :  { %1445 = vmatpush1.bf16.msra.mxu0 %v2309_v1  ;;  %v1971_v1 = vld [vmem:[%s2776_s10 + $0x28] sm:$0xff]  }
 0x2c3   :  { %1446 = vmatprep.subr.bf16.mxu0 %v2314_v30 }
 0x2c6   :  { %1447 = vmatpush1.bf16.msra.mxu0 %v2312_v31 }
 0x2c7   :  { %1448 = vmatprep.subr.bf16.mxu0 %v2317_v32 }
 0x2ca   :  { %1449 = vmatpush1.bf16.msra.mxu0 %v2315_v33 }
 0x37f   :  { %v949_v2 = vpop.f32.mrb[8].mxu1  ;;  %v992_v3 = vpop.f32.mrb[8].mxu0 }
 0x380   :  { %v951_v4 = vpop.f32.mrb[9].mxu1  ;;  %v2100_v5 = vpop.f32.mrb[9].mxu0 }
 0x381   :  { %v953_v6 = vpop.f32.mrb[10].mxu1  ;;  %v995_v8 = vpop.f32.mrb[10].mxu0  ;;  %v1959_v5 = vunpack.c.h.bf16 %v1971_v1 }
 0x382   :  { %v2180_v9 = vpack.c.bf16 %v953_v6, %v949_v2  ;;  %v2184_v10 = vpack.c.bf16 %v995_v8, %v992_v3  ;;  %v955_v11 = vpop.f32.mrb[11].mxu1  ;;  %v2101_v12 = vpop.f32.mrb[11].mxu0  ;;  %v1955_v2 = vunpack.c.h.bf16 %v1970_v62  ;;  %v1958_v3 = vunpack.c.l.bf16 %v1971_v1  ;;  %v1967_v8 = vld [vmem:[%s2776_s10 + $0x8] sm:$0xff]  }
 0x383   :  { %v2176_v13 = vpack.c.bf16 %v955_v11, %v951_v4  ;;  %v1937_v4 = vld [vmem:[%s2776_s10] sm:$0xff]   ;;  %v1968_v11 = vld [vmem:[%s2776_s10 + $0x10] sm:$0xff]   ;;  %v1943_v12 = vunpack.c.h.bf16 %v1967_v8  ;;  %s2347_s10 = smov [#allocation2]  }
 0x384   :  { %v1938_v6 = vunpack.c.l.bf16 %v1937_v4  ;;  %v1947_v14 = vunpack.c.h.bf16 %v1968_v11  ;;  %s1763_s20 = sshll.u32 %s2347_s10, 4  ;;  %s1764_s20 = int_to_ptr.vmem [resolvable:$true] %s1763_s20 }
 0x385   :  { %2177 = vmatprep.subr.bf16.mxu1 %v2176_v13  ;;  %p2323_p1 = scmp.lt.s32.totalorder %s1764_s20, %s1764_s20 }
 0x386   :  { %2179 = vmatpush3.bf16.msra.mxu1 %v2176_v13  ;;  %v1946_v13 = vunpack.c.l.bf16 %v1968_v11 }
 0x387   :  { %2181 = vmatprep.subr.bf16.mxu1 %v2180_v9 }
 0x389   :  { %2107 = vmatmul.mubr.msk.f32.vlgmr.msra.gmra.mrb[12].mxu1 %vm1016_vm14, %v1923_v15  ;;  %v1899_v15 = vld [vmem:[%s2777_s11] ss:$0 sm:$0xff]  ;;  %s2318_s11 = scalar_lea.vmem %s1764_s20, 768 }
 0x38a   :  { %2183 = vmatpush3.bf16.msra.mxu1 %v2180_v9  ;;  %2109 = vmatprep.mubr.msk.f32.mxu1 %vm1016_vm14, %v1926_v16  ;;  %v1939_v9 = vunpack.c.h.bf16 %v1937_v4  ;;  %p2319_p0 = scmp.ne.s32.totalorder %s1764_s20, %s2318_s11  ;;  %p2324_p2 = scmp.lt.s32.totalorder %s2318_s11, %s2318_s11 }
 0x38b   :  { %2185 = vmatprep.subr.bf16.mxu1 %v2184_v10 }
 0x38c   :  { %p2325_p3 = por %p2324_p2, %p2323_p1 }
 0x38d   :  { %2110 = vmatmul.mubr.msk.f32.gmra.mrb[14].mxu1 %vm1016_vm14, %v1927_v18 }
 0x38e   :  { %2116 = vmatprep.mubr.msk.f32.mxu1 %vm1016_vm14, %v1914_v19  ;;  %p2326_p4 = pnand %p2325_p3, %p2319_p0 }
 0x391   :  { %2117 = vmatmul.mubr.msk.f32.vlgmr.msra.gmra.mrb[12].mxu1 %vm1016_vm14, %v1915_v21 }
 0x392   :  { %2187 = vmatpush3.bf16.msra.mxu1 %v2184_v10  ;;  %2119 = vmatprep.mubr.msk.f32.mxu1 %vm1016_vm14, %v1918_v22  ;;  %v1942_v10 = vunpack.c.l.bf16 %v1967_v8 }
 0x395   :  { %2120 = vmatmul.mubr.msk.f32.gmra.mrb[14].mxu1 %vm1016_vm14, %v1919_v24 }
 0x396   :  { %2126 = vmatprep.mubr.msk.f32.mxu1 %vm1016_vm14, %v1930_v25 }
 0x399   :  { %2127 = vmatmul.mubr.msk.f32.vlgmr.msra.gmra.mrb[12].mxu1 %vm1016_vm14, %v1931_v27 }
 0x39a   :  { %2129 = vmatprep.mubr.msk.f32.mxu1 %vm1016_vm14, %v1934_v28 }
 0x39d   :  { %2130 = vmatmul.mubr.msk.f32.gmra.mrb[14].mxu1 %vm1016_vm14, %v1935_v29 }
 0x39e   :  { %2140 = vmatprep.mubr.msk.f32.mxu1 %vm1512_vm15, %v1950_v50 }
 0x46c   :  { %v2128_v35 = vpop.f32.mrb[12].mxu1 }
 0x46d   :  { %v1329_v36 = vadd.f32 %v2128_v35, %v1864_v34  ;;  %v1298_v38 = vpop.f32.mrb[13].mxu1 }
 0x46e   :  { %v1328_v39 = vadd.f32 %v1864_v34, %v1298_v38 }
 0x46f   :  { %v1333_v40 = vmax.f32 %v1329_v36, 0.0 }
 0x470   :  { %v1332_v41 = vmax.f32 %v1328_v39, 0.0  ;;  %v2131_v42 = vpop.f32.mrb[14].mxu1 }
 0x471   :  { %v1331_v43 = vadd.f32 %v2131_v42, %v1864_v34  ;;  %v1308_v44 = vpop.f32.mrb[15].mxu1 }
 0x472   :  { %v1336_v45 = vpack.c.bf16 %v1333_v40, %v1332_v41  ;;  %v1330_v46 = vadd.f32 %v1864_v34, %v1308_v44 }
 0x473   :  { %v1335_v47 = vmax.f32 %v1331_v43, 0.0 }
 0x474   :  { %v1334_v48 = vmax.f32 %v1330_v46, 0.0  ;;  %1467 = vmatmul.mubr.bf16.vlgmr.msra.gmra.mrb[12].mxu0 %v1336_v45 }
 0x475   :  { %1476 = vmatprep.mubr.bf16.mxu0 %v2346_v37 }
 0x476   :  { %v1337_v49 = vpack.c.bf16 %v1335_v47, %v1334_v48 }
 0x47c   :  { %1477 = vmatmul.mubr.bf16.gmra.mrb[16].mxu0 %v1337_v49 }
 0x547   :  { %v1468_v51 = vpop.f32.mrb[12].mxu0 }
 0x548   :  { %v1470_v52 = vpop.f32.mrb[13].mxu0 }
 0x549   :  { %v1472_v53 = vpop.f32.mrb[14].mxu0 }
 0x54a   :  { %v2196_v54 = vpack.c.bf16 %v1472_v53, %v1468_v51  ;;  %v1474_v55 = vpop.f32.mrb[15].mxu0 }
 0x54b   :  { %v2188_v56 = vpack.c.bf16 %v1474_v55, %v1470_v52 }
 0x54d   :  { %2189 = vmatprep.subr.bf16.mxu1 %v2188_v56 }
 0x54e   :  { %2191 = vmatpush3.bf16.msra.mxu1 %v2188_v56 }
 0x54f   :  { %v1478_v57 = vpop.f32.mrb[16].mxu0 }
 0x550   :  { %v1480_v37 = vpop.f32.mrb[17].mxu0 }
 0x551   :  { %v1482_v58 = vpop.f32.mrb[18].mxu0 }
 0x552   :  { %v2200_v59 = vpack.c.bf16 %v1482_v58, %v1478_v57  ;;  %v1484_v60 = vpop.f32.mrb[19].mxu0 }
 0x553   :  { %v2192_v61 = vpack.c.bf16 %v1484_v60, %v1480_v37 }
 0x555   :  { %2193 = vmatprep.subr.bf16.mxu1 %v2192_v61 }
 0x556   :  { %2195 = vmatpush3.bf16.msra.mxu1 %v2192_v61 }
 0x557   :  { %2197 = vmatprep.subr.bf16.mxu1 %v2196_v54 }
 0x559   :  { %2141 = vmatmul.mubr.msk.f32.vlgmr.msra.gmra.mrb[16].mxu1 %vm1512_vm15, %v1951_v63 }
 0x55a   :  { %2199 = vmatpush3.bf16.msra.mxu1 %v2196_v54  ;;  %2143 = vmatprep.mubr.msk.f32.mxu1 %vm1512_vm15, %v1954_v0 }
 0x55b   :  { %2201 = vmatprep.subr.bf16.mxu1 %v2200_v59 }
 0x55d   :  { %2144 = vmatmul.mubr.msk.f32.gmra.mrb[18].mxu1 %vm1512_vm15, %v1955_v2 }
 0x55e   :  { %2203 = vmatpush3.bf16.msra.mxu1 %v2200_v59  ;;  %2146 = vmatprep.mubr.msk.f32.mxu1 %vm1512_vm15, %v1958_v3 }
 0x561   :  { %2147 = vmatmul.mubr.msk.f32.gmra.mrb[20].mxu1 %vm1512_vm15, %v1959_v5 }
 0x562   :  { %2157 = vmatprep.mubr.msk.f32.mxu1 %vm1512_vm15, %v1938_v6 }
 0x565   :  { %2158 = vmatmul.mubr.msk.f32.vlgmr.msra.gmra.mrb[16].mxu1 %vm1512_vm15, %v1939_v9 }
 0x566   :  { %2160 = vmatprep.mubr.msk.f32.mxu1 %vm1512_vm15, %v1942_v10 }
 0x569   :  { %2161 = vmatmul.mubr.msk.f32.gmra.mrb[18].mxu1 %vm1512_vm15, %v1943_v12 }
 0x56a   :  { %2163 = vmatprep.mubr.msk.f32.mxu1 %vm1512_vm15, %v1946_v13 }
 0x56d   :  { %2164 = vmatmul.mubr.msk.f32.gmra.mrb[20].mxu1 %vm1512_vm15, %v1947_v14 }
 0x638   :  { %v2159_v16 = vpop.f32.mrb[16].mxu1 }
 0x639   :  { %v1747_v17 = vadd.f32 %v2159_v16, %v1899_v15  ;;  %v1710_v18 = vpop.f32.mrb[17].mxu1 }
 0x63a   :  { %v1746_v19 = vadd.f32 %v1899_v15, %v1710_v18 }
 0x63b   :  { %1753 = vst [vmem:[#allocation2 + $0x8] sm:$0xff] %v1747_v17 }
 0x63c   :  { %1752 = vst [vmem:[#allocation2] sm:$0xff] %v1746_v19  ;;  %v2162_v20 = vpop.f32.mrb[18].mxu1 }
 0x63d   :  { %v1749_v21 = vadd.f32 %v2162_v20, %v1899_v15  ;;  %v1720_v22 = vpop.f32.mrb[19].mxu1 }
 0x63e   :  { %v1748_v23 = vadd.f32 %v1899_v15, %v1720_v22 }
 0x63f   :  { %1755 = vst [vmem:[#allocation2 + $0x18] sm:$0xff] %v1749_v21 }
 0x640   :  { %1754 = vst [vmem:[#allocation2 + $0x10] sm:$0xff] %v1748_v23  ;;  %v2165_v24 = vpop.f32.mrb[20].mxu1 }
 0x641   :  { %v1751_v25 = vadd.f32 %v2165_v24, %v1899_v15  ;;  %v1730_v26 = vpop.f32.mrb[21].mxu1 }
 0x642   :  { %v1750_v27 = vadd.f32 %v1899_v15, %v1730_v26 }
 0x643   :  { %1757 = vst [vmem:[#allocation2 + $0x28] sm:$0xff] %v1751_v25 }
 0x644   :  { %1756 = vst [vmem:[#allocation2 + $0x20] sm:$0xff] %v1750_v27 }
 0x645   :  { %2329 = shalt.err (!%p2326_p4)
}
 0x646   :  { %s2330_s21 = scalar_lea.hbm %s2778_s12, 768 }
 0x647   :  { %p2331_p5 = scmp.ne.s32.totalorder %s2778_s12, %s2330_s21  ;;  %p2334_p6 = scmp.lt.u32.totalorder %s2330_s21, %s2778_s12 }
 0x649   :  { %p2336_p7 = pnand %p2334_p6, %p2331_p5 }
 0x64b   :  { %2339 = shalt.err (!%p2336_p7)
}
 0x64c   :  { %s2348_s7 = smov 128   ;;  %s2349_s3 = smov 8  }
 0x64d   :  { %1769 = dma.vmem_to_hbm [thread:$0]  %s1764_s20, 768, %s2778_s12, [#allocation3], %s2348_s7, %s2348_s7, %s2349_s3  }
 0x64e   :  { %2340 = dma.done.wait [#allocation3], 768  }
 0x64f   :  { %2341 = vsyncadd [#allocation3], 4294966528 }
 0x650   :  { %1773 = vsyncpa [#allocation3], 1 }

</bundles_post_ra>
